<compile_context>
chip_gen: v7x
topology: tpu7x:2x2x1
jax: 0.10.0
libtpu: 0.0.40
codegen_flags: <defaults>
</compile_context>

<pallas_src>
import functools
import math

import jax
import jax.numpy as jnp
from jax import lax
from jax.experimental import pallas as pl
from jax.experimental.pallas import tpu as pltpu

_LANE = 128


def _dsconv_kernel(x_ref, m_ref, b_ref, o_ref, slab_ref, *,
                   TH, H, WC, WCo, K, pad, S, ROFF):
    """One (batch, H-strip) grid step.

    x_ref   : (1, H, W*C)        packed, UNPADDED input image (VMEM resident)
    m_ref   : (K, W*C, W*C_out)  banded depthwise(+W-pad)⊗pointwise row matrices
    b_ref   : (1, W*C_out)       combined bias (b_dw folded through W_pw, plus b_pw)
    o_ref   : (1, TH, W*C_out)   output strip (lane-dense when W*C_out % 128 == 0)
    slab_ref: (2*ROFF+TH, W*C)   f32 scratch; rows [ROFF-pad, ROFF+TH+pad) hold the
                                 vertically zero-padded strip slab.
    """
    f32 = jnp.float32
    s = pl.program_id(1)
    row0 = pl.multiple_of(s * TH, TH)              # first output row of this strip

    # ---- assemble the vertically padded slab in VMEM scratch.
    # Core TH rows: always valid; aligned load and aligned store.
    slab_ref[ROFF:ROFF + TH, :] = x_ref[0, pl.ds(row0, TH), :].astype(f32)

    if pad > 0:
        zeros_blk = jnp.zeros((ROFF, WC), f32)

        @pl.when(s == 0)                           # top halo = zero padding
        def _():
            slab_ref[0:ROFF, :] = zeros_blk

        @pl.when(s == S - 1)                       # bottom halo = zero padding
        def _():
            slab_ref[ROFF + TH:2 * ROFF + TH, :] = zeros_blk

        if S > 1:
            @pl.when(s > 0)                        # top halo = last rows of strip above
            def _():
                slab_ref[0:ROFF, :] = (
                    x_ref[0, pl.ds(row0 - ROFF, ROFF), :].astype(f32))

            @pl.when(s < S - 1)                    # bottom halo = first rows below
            def _():
                slab_ref[ROFF + TH:2 * ROFF + TH, :] = (
                    x_ref[0, pl.ds(row0 + TH, ROFF), :].astype(f32))

    # ---- single slab load; K row taps are static sublane-offset views of it.
    slab = slab_ref[...]                           # (2*ROFF + TH, W*C), f32

    # ---- K MXU matmuls (depthwise row kh, W-padding and pointwise folded in m_ref[kh]).
    acc = jnp.broadcast_to(b_ref[...].astype(f32), (TH, WCo))
    for kh in range(K):                            # static unroll, K is small
        lo = ROFF - pad + kh
        tap = slab[lo:lo + TH, :]                  # input rows row0 + i + (kh - pad)
        acc = acc + jnp.dot(tap, m_ref[kh], preferred_element_type=f32)

    o_ref[0] = acc.astype(o_ref.dtype)


def _pick_strip_height(H, vmem_need_fn, budget_bytes):
    """Largest strip height dividing H (multiples of 8, or H itself) fitting budget."""
    cands = sorted({t for t in range(8, H + 1, 8) if H % t == 0} | {H}, reverse=True)
    for t in cands:
        if vmem_need_fn(t) <= budget_bytes:
            return t
    return cands[-1]


def depthwise_separable_conv(x_nchw, w_dw, b_dw, w_pw, b_pw, *, padding=1,
                             vmem_budget_bytes=24 * 1024 * 1024):
    """x_nchw: (N, C, H, W);  w_dw: (C, 1, K, K);  b_dw: (C,);
    w_pw: (C_out, C, 1, 1);  b_pw: (C_out,).  Returns (N, C_out, H, W)."""
    N, C, H, W = x_nchw.shape
    K = w_dw.shape[-1]
    C_out = w_pw.shape[0]
    pad = padding
    if 2 * pad != K - 1:
        raise ValueError("kernel assumes 'same' depthwise conv: 2*padding == K-1")

    # Lane-density guard: pad C_out so the packed output width W*C_out is a multiple of
    # 128 (unmasked, lane-dense vst); padded channels are sliced off afterwards.
    step = _LANE // math.gcd(W, _LANE)
    C_out_p = C_out if (W * C_out) % _LANE == 0 else (-(-C_out // step)) * step

    WC, WCo = W * C, W * C_out_p
    ROFF = max(8, ((pad + 7) // 8) * 8)            # aligned halo-block height (>= pad)

    def vmem_need(TH):
        return 4 * (2 * H * WC            # image block (double-buffered)
                    + 2 * K * WC * WCo    # banded weights
                    + 2 * WCo             # bias
                    + 2 * TH * WCo        # output strip
                    + (2 * ROFF + TH) * WC)  # slab scratch

    TH = _pick_strip_height(H, vmem_need, vmem_budget_bytes)
    S = H // TH
    if S > 1 and TH < ROFF:
        raise ValueError("strip height must cover the halo block")
    # TODO(synk): for images whose packed rows do not fit the VMEM budget even at TH=8,
    # switch the image operand to memory_space=pl.ANY and manually DMA TH+K-1 row slabs
    # (double-buffered); on v7x (64 MiB VMEM) also drop the constant operands to a single
    # buffer (pipeline_mode=pl.Buffered(1)).

    f32 = jnp.float32

    # --- wrapper relayout (the only host-side pass): NCHW -> (N, H, W*C), no jnp.pad.
    x_packed = jnp.transpose(x_nchw, (0, 2, 3, 1)).reshape(N, H, WC)

    # --- fold depthwise taps, horizontal zero-padding and the pointwise 1x1 into K
    #     banded matrices M[kh] : (W*C, W*C_out_p); fold b_dw through W_pw into b_comb.
    wpw_cc = jnp.transpose(w_pw[:, :, 0, 0], (1, 0)).astype(f32)          # (C, C_out)
    wpw_cc = jnp.pad(wpw_cc, ((0, 0), (0, C_out_p - C_out)))              # (C, C_out_p)
    taps = jnp.einsum('ckl,cm->klcm', w_dw[:, 0, :, :].astype(f32), wpw_cc)  # (K,K,C,Cop)
    m_rows = []
    for kh in range(K):
        mk = jnp.zeros((WC, WCo), f32)
        for kw in range(K):
            band = jnp.eye(W, k=pad - kw, dtype=f32)   # band[iw, w]=1 iff iw = w+kw-pad
            mk = mk + jnp.kron(band, taps[kh, kw])
        m_rows.append(mk)
    m_packed = jnp.stack(m_rows)                                          # (K, W*C, WCo)

    b_comb = jnp.einsum('c,cm->m', b_dw.astype(f32), wpw_cc)
    b_comb = b_comb + jnp.pad(b_pw.astype(f32), (0, C_out_p - C_out))
    b_packed = jnp.tile(b_comb, W).reshape(1, WCo)                        # (1, W*C_out_p)

    kernel = functools.partial(_dsconv_kernel, TH=TH, H=H, WC=WC, WCo=WCo,
                               K=K, pad=pad, S=S, ROFF=ROFF)

    flops = N * H * 2 * K * WC * WCo                    # MXU flops (banded, incl. zeros)
    bytes_accessed = 4 * (x_packed.size + N * H * WCo + m_packed.size + WCo)

    out_packed = pl.pallas_call(
        kernel,
        out_shape=jax.ShapeDtypeStruct((N, H, WCo), x_nchw.dtype),
        grid_spec=pltpu.PrefetchScalarGridSpec(
            num_scalar_prefetch=0,
            # Batch axis first: the image block is constant along the strip axis, so the
            # two v7x TensorCores should split over images, not strips.
            grid=(N, S),
            in_specs=[
                # Full packed image; block index constant along s -> VMEM resident.
                pl.BlockSpec((1, H, WC), lambda n, s: (n, 0, 0)),
                pl.BlockSpec((K, WC, WCo), lambda n, s: (0, 0, 0)),
                pl.BlockSpec((1, WCo), lambda n, s: (0, 0)),
            ],
            out_specs=pl.BlockSpec((1, TH, WCo), lambda n, s: (n, s, 0)),
            scratch_shapes=[pltpu.VMEM((2 * ROFF + TH, WC), jnp.float32)],
        ),
        compiler_params=pltpu.CompilerParams(
            dimension_semantics=("parallel", "parallel"),
            vmem_limit_bytes=32 * 1024 * 1024),
        cost_estimate=pl.CostEstimate(
            flops=flops, transcendentals=0, bytes_accessed=bytes_accessed),
    )(x_packed, m_packed, b_packed)

    out = out_packed.reshape(N, H, W, C_out_p)[..., :C_out]
    return jnp.transpose(out, (0, 3, 1, 2))                               # (N,C_out,H,W)


def _reference(x_nchw, w_dw, b_dw, w_pw, b_pw, *, padding=1):
    """Plain-JAX reference (grouped conv + 1x1 conv), NCHW."""
    C = x_nchw.shape[1]
    dw = lax.conv_general_dilated(
        x_nchw, w_dw, window_strides=(1, 1),
        padding=((padding, padding), (padding, padding)),
        feature_group_count=C,
        dimension_numbers=("NCHW", "OIHW", "NCHW"))
    dw = dw + b_dw.reshape(1, -1, 1, 1)
    pw = lax.conv_general_dilated(
        dw, w_pw, window_strides=(1, 1), padding=((0, 0), (0, 0)),
        dimension_numbers=("NCHW", "OIHW", "NCHW"))
    return pw + b_pw.reshape(1, -1, 1, 1)


if __name__ == "__main__":
    N, C_in, C_out, H, W, K = 2, 4, 8, 16, 16, 3

    key = jax.random.PRNGKey(0)
    kx, k1, k2, k3, k4 = jax.random.split(key, 5)

    x = jax.random.normal(kx, (N, C_in, H, W), dtype=jnp.float32)
    # Parameter shapes mirror nn.Conv2d(groups=C_in) and nn.Conv2d(1x1).
    w_dw = jax.random.normal(k1, (C_in, 1, K, K), dtype=jnp.float32) * 0.1
    b_dw = jax.random.normal(k2, (C_in,), dtype=jnp.float32) * 0.1
    w_pw = jax.random.normal(k3, (C_out, C_in, 1, 1), dtype=jnp.float32) * 0.1
    b_pw = jax.random.normal(k4, (C_out,), dtype=jnp.float32) * 0.1

    out = depthwise_separable_conv(x, w_dw, b_dw, w_pw, b_pw, padding=1)
    out = jax.block_until_ready(out)

    ref = _reference(x, w_dw, b_dw, w_pw, b_pw, padding=1)
    assert out.shape == (N, C_out, H, W)
    assert jnp.allclose(out, ref, atol=1e-4, rtol=1e-4), "mismatch vs reference"

    print("KERNEL_OK")
</pallas_src>

<mosaic_0001>
module attributes {stable_mosaic.version = 11 : i64} {
  func.func @_dsconv_kernel(%arg0: i32, %arg1: i32, %arg2: memref<1x16x64xf32, #tpu.memory_space<vmem>>, %arg3: memref<3x64x128xf32, #tpu.memory_space<vmem>>, %arg4: memref<1x128xf32, #tpu.memory_space<vmem>>, %arg5: memref<1x16x128xf32, #tpu.memory_space<vmem>>, %arg6: memref<32x64xf32, #tpu.memory_space<vmem>>) attributes {dimension_semantics = [#tpu.dimension_semantics<parallel>, #tpu.dimension_semantics<parallel>], iteration_bounds = array<i64: 2, 1>, scalar_prefetch = 0 : i64, scratch_operands = 1 : i64, tpu.core_type = #tpu.core_type<tc>, window_params = [{transform_indices = @transform_0, window_bounds = array<i64: 1, 16, 64>}, {pipeline_mode = #tpu.pipeline_mode<synchronous>, transform_indices = @transform_1, window_bounds = array<i64: 3, 64, 128>}, {pipeline_mode = #tpu.pipeline_mode<synchronous>, transform_indices = @transform_2, window_bounds = array<i64: 1, 128>}, {transform_indices = @transform_3, window_bounds = array<i64: 1, 16, 128>}]} {
    %c16_i32 = arith.constant 16 : i32
    %0 = arith.muli %arg1, %c16_i32 : i32
    %1 = tpu.assume_multiple %0, 16 : i32
    %c0 = arith.constant 0 : index
    %2 = arith.index_cast %1 : i32 to index
    %c0_0 = arith.constant 0 : index
    %3 = vector.load %arg2[%c0, %2, %c0_0] : memref<1x16x64xf32, #tpu.memory_space<vmem>>, vector<1x16x64xf32>
    %4 = vector.shape_cast %3 : vector<1x16x64xf32> to vector<16x64xf32>
    %c8 = arith.constant 8 : index
    %c0_1 = arith.constant 0 : index
    %5 = vector.load %arg6[%c8, %c0_1] : memref<32x64xf32, #tpu.memory_space<vmem>>, vector<16x64xf32>
    tpu.vector_store %arg6[%c8, %c0_1], %4 {strides = array<i32>} : memref<32x64xf32, #tpu.memory_space<vmem>>, vector<16x64xf32>,
    %cst = arith.constant 0.000000e+00 : f32
    %6 = vector.broadcast %cst : f32 to vector<8x64xf32>
    %c0_i32 = arith.constant 0 : i32
    %7 = arith.cmpi eq, %arg1, %c0_i32 : i32
    %8 = arith.extui %7 : i1 to i32
    %c0_i32_2 = arith.constant 0 : i32
    %9 = arith.cmpi ne, %8, %c0_i32_2 : i32
    scf.if %9 {
      %c0_22 = arith.constant 0 : index
      %c0_23 = arith.constant 0 : index
      %35 = vector.load %arg6[%c0_22, %c0_23] : memref<32x64xf32, #tpu.memory_space<vmem>>, vector<8x64xf32>
      tpu.vector_store %arg6[%c0_22, %c0_23], %6 {strides = array<i32>} : memref<32x64xf32, #tpu.memory_space<vmem>>, vector<8x64xf32>,
    } else {
    }
    %c0_i32_3 = arith.constant 0 : i32
    %10 = arith.cmpi eq, %arg1, %c0_i32_3 : i32
    %11 = arith.extui %10 : i1 to i32
    %c0_i32_4 = arith.constant 0 : i32
    %12 = arith.cmpi ne, %11, %c0_i32_4 : i32
    scf.if %12 {
      %c24 = arith.constant 24 : index
      %c0_22 = arith.constant 0 : index
      %35 = vector.load %arg6[%c24, %c0_22] : memref<32x64xf32, #tpu.memory_space<vmem>>, vector<8x64xf32>
      tpu.vector_store %arg6[%c24, %c0_22], %6 {strides = array<i32>} : memref<32x64xf32, #tpu.memory_space<vmem>>, vector<8x64xf32>,
    } else {
    }
    %c0_5 = arith.constant 0 : index
    %c0_6 = arith.constant 0 : index
    %13 = vector.load %arg6[%c0_5, %c0_6] : memref<32x64xf32, #tpu.memory_space<vmem>>, vector<32x64xf32>
    %c0_7 = arith.constant 0 : index
    %c0_8 = arith.constant 0 : index
    %14 = vector.load %arg4[%c0_7, %c0_8] : memref<1x128xf32, #tpu.memory_space<vmem>>, vector<1x128xf32>
    %15 = vector.shape_cast %14 : vector<1x128xf32> to vector<1x128xf32>
    %16 = vector.broadcast %15 : vector<1x128xf32> to vector<16x128xf32>
    %17 = vector.extract_strided_slice %13 {offsets = [7, 0], sizes = [16, 64], strides = [1, 1]} : vector<32x64xf32> to vector<16x64xf32>
    %c0_9 = arith.constant 0 : index
    %c0_10 = arith.constant 0 : index
    %c0_11 = arith.constant 0 : index
    %18 = vector.load %arg3[%c0_9, %c0_10, %c0_11] : memref<3x64x128xf32, #tpu.memory_space<vmem>>, vector<1x64x128xf32>
    %19 = vector.shape_cast %18 : vector<1x64x128xf32> to vector<64x128xf32>
    %cst_12 = arith.constant dense<0.000000e+00> : vector<16x128xf32>
    %20 = tpu.matmul %17, %19, %cst_12 {dimension_numbers = #tpu.dot_dimension_numbers<[1], [0], [0], [1], [0, 0, 1, 1], [], []>} : vector<16x64xf32>, vector<64x128xf32>, vector<16x128xf32> -> vector<16x128xf32>
    %21 = arith.addf %16, %20 : vector<16x128xf32>
    %22 = vector.extract_strided_slice %13 {offsets = [8, 0], sizes = [16, 64], strides = [1, 1]} : vector<32x64xf32> to vector<16x64xf32>
    %c1 = arith.constant 1 : index
    %c0_13 = arith.constant 0 : index
    %c0_14 = arith.constant 0 : index
    %23 = vector.load %arg3[%c1, %c0_13, %c0_14] : memref<3x64x128xf32, #tpu.memory_space<vmem>>, vector<1x64x128xf32>
    %24 = vector.shape_cast %23 : vector<1x64x128xf32> to vector<64x128xf32>
    %cst_15 = arith.constant dense<0.000000e+00> : vector<16x128xf32>
    %25 = tpu.matmul %22, %24, %cst_15 {dimension_numbers = #tpu.dot_dimension_numbers<[1], [0], [0], [1], [0, 0, 1, 1], [], []>} : vector<16x64xf32>, vector<64x128xf32>, vector<16x128xf32> -> vector<16x128xf32>
    %26 = arith.addf %21, %25 : vector<16x128xf32>
    %27 = vector.extract_strided_slice %13 {offsets = [9, 0], sizes = [16, 64], strides = [1, 1]} : vector<32x64xf32> to vector<16x64xf32>
    %c2 = arith.constant 2 : index
    %c0_16 = arith.constant 0 : index
    %c0_17 = arith.constant 0 : index
    %28 = vector.load %arg3[%c2, %c0_16, %c0_17] : memref<3x64x128xf32, #tpu.memory_space<vmem>>, vector<1x64x128xf32>
    %29 = vector.shape_cast %28 : vector<1x64x128xf32> to vector<64x128xf32>
    %cst_18 = arith.constant dense<0.000000e+00> : vector<16x128xf32>
    %30 = tpu.matmul %27, %29, %cst_18 {dimension_numbers = #tpu.dot_dimension_numbers<[1], [0], [0], [1], [0, 0, 1, 1], [], []>} : vector<16x64xf32>, vector<64x128xf32>, vector<16x128xf32> -> vector<16x128xf32>
    %31 = arith.addf %26, %30 : vector<16x128xf32>
    %c0_19 = arith.constant 0 : index
    %c0_20 = arith.constant 0 : index
    %c0_21 = arith.constant 0 : index
    %32 = vector.load %arg5[%c0_19, %c0_20, %c0_21] : memref<1x16x128xf32, #tpu.memory_space<vmem>>, vector<1x16x128xf32>
    %33 = vector.shape_cast %32 : vector<1x16x128xf32> to vector<16x128xf32>
    %34 = vector.shape_cast %31 : vector<16x128xf32> to vector<1x16x128xf32>
    tpu.vector_store %arg5[%c0_19, %c0_20, %c0_21], %34 {strides = array<i32>} : memref<1x16x128xf32, #tpu.memory_space<vmem>>, vector<1x16x128xf32>,
    return
  }
  func.func @transform_0(%arg0: i32, %arg1: i32) -> (i32, i32, i32) {
    %c0_i32 = arith.constant 0 : i32
    %c0_i32_0 = arith.constant 0 : i32
    %c0_i32_1 = arith.constant 0 : i32
    return %arg0, %c0_i32, %c0_i32_0 : i32, i32, i32
  }
  func.func @transform_1(%arg0: i32, %arg1: i32) -> (i32, i32, i32) {
    %c0_i32 = arith.constant 0 : i32
    %c0_i32_0 = arith.constant 0 : i32
    %c0_i32_1 = arith.constant 0 : i32
    %c0_i32_2 = arith.constant 0 : i32
    return %c0_i32, %c0_i32_0, %c0_i32_1 : i32, i32, i32
  }
  func.func @transform_2(%arg0: i32, %arg1: i32) -> (i32, i32) {
    %c0_i32 = arith.constant 0 : i32
    %c0_i32_0 = arith.constant 0 : i32
    %c0_i32_1 = arith.constant 0 : i32
    return %c0_i32, %c0_i32_0 : i32, i32
  }
  func.func @transform_3(%arg0: i32, %arg1: i32) -> (i32, i32, i32) {
    %c0_i32 = arith.constant 0 : i32
    %c0_i32_0 = arith.constant 0 : i32
    return %arg0, %arg1, %c0_i32 : i32, i32, i32
  }
}

</mosaic_0001>

<bundles_post_ra>
// kernel: tpu_custom_call.1
= control target key start
LH: loop header
LB: loop body
LE: loop exit
PB: predicated region body
PF: predicated region fallthrough
CT: control target
= control target key end

     0   :  { %8 = vsyncpa [#allocation4], 0  ;;  %s1307_s0 = inlined_call_operand.hbm [shape: f32[2,16,64], index: 0, kind: input, shape index: {}]   ;;  %s1308_s1 = inlined_call_operand.hbm [shape: f32[3,64,128], index: 1, kind: input, shape index: {}]   ;;  %s1309_s2 = inlined_call_operand.vmem [shape: f32[1,128], index: 2, kind: input, shape index: {}]   ;;  %s1310_s3 = inlined_call_operand.hbm [shape: f32[2,16,128], index: 3, kind: output, shape index: {}]  }
   0x1   :  { %10 = vsyncpa [#allocation4 + $0x1], 0 }
   0x2   :  { %11 = vsyncpa [#allocation7], 0 }
   0x3   :  { %12 = vsyncpa [#allocation5], 0 }
   0x4   :  { %14 = vsyncpa [#allocation5 + $0x1], 0  ;;  %s1061_s12 = smov 0   ;;  %s1063_s13 = smov 0  }
   0x5   :  { %s1065_s14 = smov 0   ;;  %s1067_s15 = smov 0  }
   0x6   :  { %s1069_s16 = smov 0   ;;  %s1071_s17 = smov 0  }
   0x7 LB: > { %s642_s18 = sadd.s32 4294967295, %s1031_s17   ;;  %s643_s19 = sadd.s32 4294967294, %s1031_s17   ;;  %s1031_s17 = sphi %s1071_s17, %s20_s17   ;;  %s1027_s16 = sphi %s1069_s16, %s1334_s16   ;;  %s1023_s15 = sphi %s1067_s15, %s1333_s15   ;;  %s1019_s14 = sphi %s1065_s14, %s1332_s14   ;;  %s1015_s13 = sphi %s1063_s13, %s1331_s13   ;;  %s1011_s12 = sphi %s1061_s12, %s1330_s12  }
   0x8   : > { %p52_p0 = scmp.ne.s32.totalorder %s1015_s13, %s1011_s12  ;;  %p1095_p1 = scmp.eq.s32.totalorder %s642_s18, 0 }
   0x9   : > { %p1099_p2 = scmp.eq.s32.totalorder %s642_s18, 1  ;;  %p126_p3 = scmp.eq.s32.totalorder %s643_s19, 1 }
   0xa   : > { %s1315_s20 = scalar_select %p1095_p1, 1, 0 }
   0xb   : > { %s1316_s21 = scalar_select %p1099_p2, 1, 0 }
   0xc   : > { %p1105_p4 = por %p1095_p1, %p52_p0  ;;  %p644_p5 = scmp.ge.s32.totalorder %s1031_s17, 1 }
   0xd   : > { %p1110_p6 = por %p126_p3, %p52_p0  ;;  %p133_p7 = scmp.lt.s32.totalorder %s1031_s17, 3 }
   0xe   : > { %s1317_s22 = scalar_select %p1105_p4, 1, 0 }
   0xf   : > { %s1318_s23 = scalar_select %p1110_p6, 1, 0 }
  0x10   : > { %p1115_p8 = pnand %p644_p5, %p133_p7  ;;  %s1033_s25 = smov [#allocation6]  }
  0x11   : > { %s145_s26 = sshll.u32 %s1033_s25, 4  ;;  %s32_s28 = sadd.s32 1, %s1027_s16  ;;  %s146_s26 = int_to_ptr.vmem [resolvable:$true] %s145_s26 }
  0x12   : > { %s1319_s24 = scalar_select %p1115_p8, 1, 0 }
  0x13   : > { %p817_p9 = pneg %p1115_p8  ;;  %s887_s4 = scalar_lea.hbm %s1308_s1, 3072 }
  0x14   : > { %p888_p12 = scmp.ne.s32.totalorder %s1308_s1, %s887_s4  ;;  %p894_p5 = scmp.lt.u32.totalorder %s887_s4, %s1308_s1 }
  0x15   : > { %p1124_p11 = pnand %p817_p9, %p1095_p1 }
  0x17   : > { %p889_p13 = pneg %p1124_p11 }
  0x19   : > { %p890_p0 = pnand %p889_p13, %p888_p12 }
  0x1b   : > { %p891_p3 = pneg %p890_p0 }
  0x1d   : > { %p896_p7 = pnand %p894_p5, %p891_p3 }
  0x1f   : > { %899 = shalt.err (!%p896_p7)
}
  0x20   : > { %s900_s9 = scalar_lea.vmem %s146_s26, 3072  ;;  %p908_p1 = scmp.lt.s32.totalorder %s146_s26, %s146_s26 }
  0x21   : > { %p901_p9 = scmp.ne.s32.totalorder %s146_s26, %s900_s9  ;;  %p909_p4 = scmp.lt.s32.totalorder %s900_s9, %s900_s9 }
  0x23   : > { %p903_p10 = pnand %p901_p9, %p889_p13  ;;  %p910_p8 = por %p909_p4, %p908_p1 }
  0x25   : > { %p904_p6 = pneg %p903_p10 }
  0x27   : > { %p911_p2 = pnand %p910_p8, %p904_p6 }
  0x29   : > { %914 = shalt.err (!%p911_p2)
}
  0x2a   : > { %s1034_s10 = smov 128   ;;  %s1035_s11 = smov 8  }
  0x2b   : > { %820 = dma.hbm_to_vmem [thread:$0]  (!%p1124_p11), %s1308_s1, 3072, %s146_s26, [#allocation7], %s1034_s10, %s1034_s10, %s1035_s11  }
  0x2c   : > { %p34_p1 = scmp.ge.s32.totalorder %s32_s28, 2  ;;  %s39_s25 = sadd.s32 1, %s1019_s14 }
  0x2d   : > { %p46_p2 = scmp.ne.s32.totalorder %s1019_s14, %s1015_s13  ;;  %p47_p4 = scmp.eq.s32.totalorder %s1031_s17, 0 }
  0x2e   : > { %s1336_s28 = smov (%p34_p1, %s32_s28), 0  ;;  %p1322_p8 = scmp.ne.s32.totalorder %s1316_s21, 0 }
  0x2f   : > { %p1154_p6 = por %p47_p4, %p46_p2  ;;  %s36_s30 = ssub.s32 %s1027_s16, %s1336_s28 }
  0x30   : > { %p1160_p10 = por %p1322_p8, %p46_p2  ;;  %p830_p12 = scmp.lt.s32.totalorder %s1031_s17, 2 }
  0x31   : > { %p37_p11 = scmp.eq.s32.totalorder %s36_s30, 0  ;;  %s162_s26 = sand.u32 1, %s1019_s14  }
  0x32   : > { %s647_s4 = sshll.u32 %s162_s26, 4  ;;  %s666_s6 = sshll.u32 %s1027_s16, 8 }
  0x33   : > { %s1169_s5 = scalar_select %p37_p11, %s1019_s14, %s39_s25  }
  0x34   : > { %s1175_s9 = scalar_lea.hbm %s1307_s0, %s666_s6  ;;  %s166_s21 = scalar_lea.vmem [#allocation3], %s647_s4 }
  0x35   : > { %s173_s18 = sshll.u32 %s166_s21, 4  ;;  %p1181_p13 = pnand %p830_p12, %p1154_p6  ;;  %s1177_s18 = int_to_ptr.vmem [resolvable:$true] %s173_s18 }
  0x36   : > { %s1185_s25 = scalar_lea.sflag [#allocation4], %s162_s26  ;;  %s915_s30 = scalar_lea.hbm %s1175_s9, 256 }
  0x37   : > { %p916_p0 = scmp.ne.s32.totalorder %s1175_s9, %s915_s30  ;;  %p917_p3 = pneg %p1181_p13 }
  0x38   : > { %s920_s29 = scalar_lea.hbm %s1307_s0, 512  ;;  %p921_p9 = scmp.lt.u32.totalorder %s1175_s9, %s1307_s0 }
  0x39   : > { %p918_p5 = pnand %p917_p3, %p916_p0  ;;  %p922_p1 = scmp.lt.u32.totalorder %s920_s29, %s915_s30 }
  0x3a   : > { %p924_p4 = scmp.lt.u32.totalorder %s915_s30, %s1175_s9 }
  0x3b   : > { %p919_p7 = pneg %p918_p5  ;;  %p923_p2 = por %p922_p1, %p921_p9 }
  0x3d   : > { %p925_p6 = por %p924_p4, %p923_p2 }
  0x3f   : > { %p926_p8 = pnand %p925_p6, %p919_p7 }
  0x41   : > { %929 = shalt.err (!%p926_p8)
}
  0x42   : > { %s930_s26 = scalar_lea.vmem %s1177_s18, 256  ;;  %s1036_s21 = smov [#allocation3]  }
  0x43   : > { %p931_p12 = scmp.ne.s32.totalorder %s1177_s18, %s930_s26  ;;  %s935_s4 = sshll.u32 %s1036_s21, 4  ;;  %s936_s4 = int_to_ptr.vmem [resolvable:$false] %s935_s4 }
  0x44   : > { %s937_s6 = scalar_lea.vmem %s936_s4, 512  ;;  %p938_p5 = scmp.lt.s32.totalorder %s1177_s18, %s936_s4 }
  0x45   : > { %p933_p11 = pnand %p931_p12, %p917_p3  ;;  %p939_p9 = scmp.lt.s32.totalorder %s937_s6, %s930_s26 }
  0x47   : > { %p934_p0 = pneg %p933_p11  ;;  %p940_p1 = por %p939_p9, %p938_p5 }
  0x49   : > { %p941_p2 = pnand %p940_p1, %p934_p0 }
  0x4b   : > { %944 = shalt.err (!%p941_p2)
}
  0x4c   : > { %824 = dma.hbm_to_vmem [thread:$0]  (!%p1181_p13), %s1175_s9, 256, %s1177_s18, %s1185_s25, %s1034_s10, %s1034_s10, %s1035_s11  }
  0x4d   : > { %p1325_p3 = scmp.ne.s32.totalorder %s1319_s24, 0 }
  0x4e   : > { %s1219_s30 = sand.u32 (!%p1325_p3), 1, %s1015_s13   ;;  %p1326_p7 = scmp.ne.s32.totalorder (!%p1325_p3), %s1317_s22, 0 }
  0x4f   : > { %185 = sbr.rel (%p1325_p3) target bundleno = 355 (0x163), region = 32  ;;  %s651_s29 = sshll.u32 (!%p1325_p3), %s1219_s30, 4 }
  0x50   : > { %s188_s7 = scalar_lea.sflag (!%p1325_p3), [#allocation4], %s1219_s30  ;;  %s191_s19 = scalar_lea.vmem (!%p1325_p3), [#allocation3], %s651_s29 }
  0x56   : > { %998 = dma.done.wait (%p1326_p7), %s188_s7, 256  }
  0x57   : > { %1000 = vsyncadd (%p1326_p7), %s188_s7, 4294967040  ;;  %p1327_p13 = scmp.ne.s32.totalorder %s1315_s20, 0 }
  0x59   : > { %1002 = dma.done.wait (%p1327_p13), [#allocation7], 3072  }
  0x5a   : > { %1004 = vsyncadd (%p1327_p13), [#allocation7], 4294964224  ;;  %vm223_vm0 = vcmask 523264   ;;  %v1037_v0 = vmov 0.0   ;;  %v342_v1 = vld [vmem:[#allocation6 + $0x40] sm:$0xff]  ;;  %v343_v2 = vld [vmem:[#allocation6 + $0x48] sm:$0xff] }
  0x5b   : > { %230 = vst.msk [vmem:[#allocation2] sm:$0xff] %vm223_vm0, %v1037_v0  ;;  %231 = vst.msk [vmem:[#allocation2 + $0x18] sm:$0xff] %vm223_vm0, %v1037_v0  ;;  %v344_v3 = vld [vmem:[#allocation6 + $0x50] sm:$0xff]  ;;  %v771_v4 = vpack.c.bf16 %v343_v2, %v342_v1  ;;  %v345_v5 = vld [vmem:[#allocation6 + $0x58] sm:$0xff]  ;;  %vm254_vm1 = vcmask 1040384   ;;  %vm441_vm2 = vcmask 1046528  }
  0x5c   : > { %v775_v6 = vpack.c.bf16 %v345_v5, %v344_v3  ;;  %v346_v7 = vld [vmem:[#allocation6 + $0x60] sm:$0xff]  ;;  %v347_v8 = vld [vmem:[#allocation6 + $0x68] sm:$0xff]  ;;  %v245_v13 = vld [vmem:[#allocation6 + $0x10] sm:$0xff]  ;;  %s217_s24 = scalar_lea.vmem [#allocation8], %s651_s29  ;;  %s667_s11 = sshll.u32 %s1023_s15, 8 }
  0x5d   : > { %v243_v9 = vld [vmem:[#allocation6] sm:$0xff]  ;;  %772 = vmatprep.subr.bf16.mxu0 %v771_v4  ;;  %v244_v10 = vld [vmem:[#allocation6 + $0x8] sm:$0xff]  ;;  %v246_v14 = vld [vmem:[#allocation6 + $0x18] sm:$0xff]  ;;  %v779_v15 = vpack.c.bf16 %v347_v8, %v346_v7  ;;  %s546_s10 = sshll.u32 %s217_s24, 4  ;;  %s1258_s25 = scalar_lea.hbm %s1310_s3, %s667_s11  ;;  %s1253_s10 = int_to_ptr.vmem [resolvable:$true] %s546_s10 }
  0x5e   : > { %v221_v11 = vld [vmem:[%s191_s19] sm:$0xff]  ;;  %774 = vmatpush3.bf16.msra.mxu0 %v771_v4  ;;  %v755_v12 = vpack.c.bf16 %v244_v10, %v243_v9  ;;  %v759_v17 = vpack.c.bf16 %v246_v14, %v245_v13  ;;  %v222_v18 = vld [vmem:[%s191_s19 + $0x8] sm:$0xff]  ;;  %s531_s8 = scalar_lea.sflag [#allocation5], %s1219_s30  ;;  %s945_s26 = scalar_lea.vmem %s1253_s10, 256 }
  0x5f   : > { %224 = vst.msk [vmem:[#allocation2 + $0x8] sm:$0xff] %vm223_vm0, %v221_v11  ;;  %776 = vmatprep.subr.bf16.mxu0 %v775_v6  ;;  %v348_v16 = vld [vmem:[#allocation6 + $0x70] sm:$0xff]  ;;  %v349_v19 = vld [vmem:[#allocation6 + $0x78] sm:$0xff]  ;;  %225 = vst.msk [vmem:[#allocation2 + $0x10] sm:$0xff] %vm223_vm0, %v222_v18  ;;  %p946_p4 = scmp.ne.s32.totalorder %s1253_s10, %s945_s26  ;;  %s1038_s15 = smov [#allocation8]  }
  0x60   : > { %756 = vmatprep.subr.bf16.mxu1 %v755_v12  ;;  %v247_v20 = vld [vmem:[#allocation6 + $0x20] sm:$0xff]  ;;  %v248_v21 = vld [vmem:[#allocation6 + $0x28] sm:$0xff]  ;;  %v783_v23 = vpack.c.bf16 %v349_v19, %v348_v16  ;;  %v249_v25 = vld [vmem:[#allocation6 + $0x30] sm:$0xff]  ;;  %s949_s21 = sshll.u32 %s1038_s15, 4  ;;  %s950_s21 = int_to_ptr.vmem [resolvable:$false] %s949_s21 }
  0x61   : > { %758 = vmatpush3.bf16.msra.mxu1 %v755_v12  ;;  %v763_v24 = vpack.c.bf16 %v248_v21, %v247_v20  ;;  %v250_v26 = vld [vmem:[#allocation6 + $0x38] sm:$0xff]  ;;  %v432_v27 = vld [vmem:[#allocation6 + $0x80] sm:$0xff]  ;;  %v433_v28 = vld [vmem:[#allocation6 + $0x88] sm:$0xff]  ;;  %p947_p6 = pnand %p946_p4, %p1160_p10  ;;  %s951_s4 = scalar_lea.vmem %s950_s21, 512 }
  0x62   : > { %778 = vmatpush3.bf16.msra.mxu0 %v775_v6  ;;  %760 = vmatprep.subr.bf16.mxu1 %v759_v17  ;;  %v232_v22 = vld [vmem:[#allocation2] sm:$0xff]  ;;  %v767_v32 = vpack.c.bf16 %v250_v26, %v249_v25  ;;  %v787_v34 = vpack.c.bf16 %v433_v28, %v432_v27  ;;  %v434_v37 = vld [vmem:[#allocation6 + $0x90] sm:$0xff]  ;;  %v435_v38 = vld [vmem:[#allocation6 + $0x98] sm:$0xff]  ;;  %p952_p12 = scmp.lt.s32.totalorder %s1253_s10, %s950_s21  ;;  %p953_p11 = scmp.lt.s32.totalorder %s951_s4, %s945_s26 }
  0x63   : > { %780 = vmatprep.subr.bf16.mxu0 %v779_v15  ;;  %v255_v29 = vrot.slane %v232_v22, 7  ;;  %v791_v41 = vpack.c.bf16 %v435_v38, %v434_v37  ;;  %v436_v43 = vld [vmem:[#allocation6 + $0xa0] sm:$0xff]  ;;  %v437_v44 = vld [vmem:[#allocation6 + $0xa8] sm:$0xff]  ;;  %v438_v47 = vld [vmem:[#allocation6 + $0xb0] sm:$0xff]  ;;  %p948_p8 = pneg %p947_p6 }
  0x64   : > { %v795_v46 = vpack.c.bf16 %v437_v44, %v436_v43  ;;  %v439_v48 = vld [vmem:[#allocation6 + $0xb8] sm:$0xff]  ;;  %v654_v55 = vld [vmem:[%s1309_s2] ss:$0 sm:$0xff]  ;;  %p954_p0 = por %p953_p11, %p952_p12 }
  0x65   : > { %762 = vmatpush3.bf16.msra.mxu1 %v759_v17  ;;  %v799_v49 = vpack.c.bf16 %v439_v48, %v438_v47  ;;  %v235_v50 = vld [vmem:[#allocation2 + $0x18] sm:$0xff] }
  0x66   : > { %v233_v30 = vld [vmem:[#allocation2 + $0x8] sm:$0xff]  ;;  %782 = vmatpush3.bf16.msra.mxu0 %v779_v15  ;;  %v234_v35 = vld [vmem:[#allocation2 + $0x10] sm:$0xff]  ;;  %764 = vmatprep.subr.bf16.mxu1 %v763_v24  ;;  %v445_v51 = vrot.slane %v235_v50, 1  ;;  %p955_p5 = pnand %p954_p0, %p948_p8 }
  0x67   : > { %v256_v31 = vrot.slane %v233_v30, 7  ;;  %733 = vmatprep.mubr.msk.f32.mxu0 %vm223_vm0, %v233_v30  ;;  %784 = vmatprep.subr.bf16.mxu0 %v783_v23  ;;  %v442_v33 = vrot.slane %v233_v30, 1  ;;  %v443_v36 = vrot.slane %v234_v35, 1  ;;  %v258_v40 = vrot.slane %v234_v35, 7 }
  0x69   : > { %v257_v39 = vsel %vm254_vm1, %v255_v29, %v256_v31  ;;  %766 = vmatpush3.bf16.msra.mxu1 %v763_v24  ;;  %v444_v42 = vsel %vm441_vm2, %v442_v33, %v443_v36  ;;  %v259_v45 = vsel %vm254_vm1, %v256_v31, %v258_v40  ;;  %v446_v52 = vsel %vm441_vm2, %v443_v36, %v445_v51 }
  0x6a   : > { %714 = vmatprep.mubr.msk.f32.mxu1 %vm223_vm0, %v257_v39  ;;  %786 = vmatpush3.bf16.msra.mxu0 %v783_v23 }
  0x6b   : > { %768 = vmatprep.subr.bf16.mxu1 %v767_v32  ;;  %788 = vmatprep.subr.bf16.mxu0 %v787_v34 }
  0x6d   : > { %734 = vmatmul.mubr.msk.f32.vlgmr.msra.gmra.mrb[0].mxu0 %vm223_vm0, %v234_v35  ;;  %770 = vmatpush3.bf16.msra.mxu1 %v767_v32 }
  0x6e   : > { %790 = vmatpush3.bf16.msra.mxu0 %v787_v34  ;;  %752 = vmatprep.mubr.msk.f32.mxu0 %vm223_vm0, %v444_v42 }
  0x6f   : > { %792 = vmatprep.subr.bf16.mxu0 %v791_v41 }
  0x70   : > { %715 = vmatmul.mubr.msk.f32.vlgmr.msra.gmra.mrb[0].mxu1 %vm223_vm0, %v259_v45 }
  0x72   : > { %794 = vmatpush3.bf16.msra.mxu0 %v791_v41 }
  0x73   : > { %796 = vmatprep.subr.bf16.mxu0 %v795_v46 }
  0x76   : > { %798 = vmatpush3.bf16.msra.mxu0 %v795_v46 }
  0x77   : > { %800 = vmatprep.subr.bf16.mxu0 %v799_v49 }
  0x7a   : > { %802 = vmatpush3.bf16.msra.mxu0 %v799_v49 }
  0x7d   : > { %753 = vmatmul.mubr.msk.f32.vlgmr.msra.gmra.mrb[0].mxu0 %vm223_vm0, %v446_v52 }
 0x143   : > { %v716_v53 = vpop.f32.mrb[0].mxu1 }
 0x144   : > { %v330_v54 = vpop.f32.mrb[1].mxu1  ;;  %v340_v56 = vadd.f32 %v716_v53, %v654_v55 }
 0x145   : > { %v339_v57 = vadd.f32 %v654_v55, %v330_v54 }
 0x150   : > { %v754_v58 = vpop.f32.mrb[0].mxu0 }
 0x151   : > { %v804_v59 = vadd.f32 %v754_v58, %v340_v56  ;;  %v517_v60 = vpop.f32.mrb[1].mxu0 }
 0x152   : > { %v806_v61 = vadd.f32 %v517_v60, %v339_v57 }
 0x153   : > { %529 = vst [vmem:[%s217_s24 + $0x8] sm:$0xff] %v804_v59 }
 0x154   : > { %528 = vst [vmem:[%s217_s24] sm:$0xff] %v806_v61 }
 0x155   : > { %958 = shalt.err (!%p955_p5)
}
 0x156   : > { %s959_s6 = scalar_lea.hbm %s1258_s25, 256  ;;  %s963_s19 = scalar_lea.hbm %s1310_s3, 512 }
 0x157   : > { %p960_p9 = scmp.ne.s32.totalorder %s1258_s25, %s959_s6  ;;  %p964_p3 = scmp.lt.u32.totalorder %s1258_s25, %s1310_s3 }
 0x158   : > { %p965_p7 = scmp.lt.u32.totalorder %s963_s19, %s959_s6  ;;  %p967_p4 = scmp.lt.u32.totalorder %s959_s6, %s1258_s25 }
 0x159   : > { %p961_p1 = pnand %p960_p9, %p1160_p10 }
 0x15a   : > { %p966_p13 = por %p965_p7, %p964_p3 }
 0x15b   : > { %p962_p2 = pneg %p961_p1 }
 0x15c   : > { %p968_p6 = por %p967_p4, %p966_p13 }
 0x15e   : > { %p969_p8 = pnand %p968_p6, %p962_p2 }
 0x160   : > { %972 = shalt.err (!%p969_p8)
}
 0x161   : > { %s1039_s24 = smov 128   ;;  %s1040_s11 = smov 8  }
 0x162   : > { %815 = dma.vmem_to_hbm [thread:$0]  (%p1160_p10), %s1253_s10, 256, %s1258_s25, %s531_s8, %s1039_s24, %s1039_s24, %s1040_s11  }
 0x163 PF: > { %s561_s9 = sand.u32 1, %s1011_s12   ;;  %p1328_p12 = scmp.ne.s32.totalorder %s1318_s23, 0 }
 0x164   : > { %p1329_p11 = scmp.ge.s32.totalorder %s1031_s17, 2  ;;  %s562_s18 = scalar_lea.sflag [#allocation5], %s561_s9 }
 0x166   : > { %p826_p0 = pnand %p1329_p11, %p1328_p12 }
 0x168   : > { %1006 = dma.done.wait (!%p826_p0), %s562_s18, 256  }
 0x169   : > { %1008 = vsyncadd (!%p826_p0), %s562_s18, 4294967040  ;;  %s20_s17 = sadd.s32 1, %s1031_s17   ;;  %s1330_s12 = smov %s1015_s13 }
 0x16a   : > { %p17_p5 = scmp.ge.s32.totalorder %s20_s17, 4   ;;  %s1331_s13 = smov %s1019_s14 }
 0x16b   : > { %s1332_s14 = smov %s1169_s5  ;;  %s1333_s15 = smov %s1027_s16 }
 0x16c   : > { %s1334_s16 = smov %s1336_s28  ;;  %19 = sbr.rel (!%p17_p5) target bundleno = 7 (0x7), region = 88 }
 0x173   :  { %567 = vsyncpa [#allocation4], 1 }
 0x174   :  { %569 = vsyncpa [#allocation4 + $0x1], 1 }
 0x175   :  { %570 = vsyncpa [#allocation7], 1 }
 0x176   :  { %571 = vsyncpa [#allocation5], 1 }
 0x177   :  { %573 = vsyncpa [#allocation5 + $0x1], 1 }

</bundles_post_ra>
